<compile_context>
chip_gen: v7x
topology: tpu7x:2x2x1
jax: 0.10.0
libtpu: 0.0.40
codegen_flags: <defaults>
</compile_context>

<pallas_src>
import jax
import jax.numpy as jnp
from jax.experimental import pallas as pl
from jax.experimental.pallas import tpu as pltpu

# TODO(synk): `layer_gen` is an externally supplied module in the original code;
# a concrete Conv3x3 -> tanh -> global-avg-pool stack is used here as its stand-in.


def _conv_net_kernel(x_ref, wc_ref, bc_ref, pool_ref, wf_ref, bf_ref, o_ref):
    # x_ref:    (Bblk*H*W, 9*Cin)      im2col patches for this batch block
    # wc_ref:   (9*Cin, Cout_pad)      conv weight, Cout zero-padded to 128 lanes
    # bc_ref:   (1, Cout_pad)
    # pool_ref: (Bblk, Bblk*H*W)       block-diagonal 1/(H*W) averaging matrix
    # wf_ref:   (Cout_pad, NCLS_pad)   fc weight, zero-padded
    # bf_ref:   (1, NCLS_pad)
    # o_ref:    (1, Bblk, NCLS_pad)
    acc = jnp.dot(x_ref[...], wc_ref[...], preferred_element_type=jnp.float32)
    h = jnp.tanh(acc + bc_ref[...])                       # (Bblk*H*W, Cout_pad)
    pooled = jnp.dot(pool_ref[...], h,
                     preferred_element_type=jnp.float32)  # (Bblk, Cout_pad) global avg pool
    logits = jnp.dot(pooled, wf_ref[...],
                     preferred_element_type=jnp.float32) + bf_ref[...]
    o_ref[0] = logits.astype(o_ref.dtype)                 # lane-dense (Bblk, 128) store


def _pick_bblk(B, H, W, cout_pad):
    # Rough per-batch-element VMEM footprint (f32): double-buffered input patch
    # tile (padded to 128 lanes) + hidden activation temp.
    per_b = H * W * (2 * 128 + cout_pad) * 4
    budget = 24 << 20            # stay under the 32 MiB scoped default (v7x: 64 MiB phys)
    cap = max(1, budget // per_b)
    # keep at least 2 grid steps so both v7x TensorCores get work
    return int(max(1, min(cap, -(-B // 2))))


def conv_net_forward(x_nchw, w_conv_hwio, b_conv, w_fc, b_fc):
    """x_nchw: (B, Cin, H, W) float32. Returns logits (B, n_classes)."""
    B, Cin, H, W = x_nchw.shape
    Cout = w_conv_hwio.shape[-1]
    NCLS = w_fc.shape[-1]
    KDIM = 9 * Cin
    LANE = 128
    cout_pad = -(-Cout // LANE) * LANE
    ncls_pad = -(-NCLS // LANE) * LANE

    bblk = _pick_bblk(B, H, W, cout_pad)
    b_pad = -(-B // bblk) * bblk
    n_blocks = b_pad // bblk

    # ---- wrapper-side im2col (XLA fuses transpose+pad+gather into one producer) ----
    x_nhwc = jnp.transpose(x_nchw, (0, 2, 3, 1))
    x_sp = jnp.pad(x_nhwc, ((0, 0), (1, 1), (1, 1), (0, 0)))
    taps = [x_sp[:, ky:ky + H, kx:kx + W, :] for ky in range(3) for kx in range(3)]
    patches = jnp.concatenate(taps, axis=-1).reshape(B, H * W, KDIM)
    if b_pad > B:
        patches = jnp.pad(patches, ((0, b_pad - B), (0, 0), (0, 0)))
    patches2d = patches.reshape(b_pad * H * W, KDIM)

    # ---- weights: flatten conv taps to (9*Cin, Cout) and zero-pad to 128 lanes ----
    w_flat = w_conv_hwio.reshape(KDIM, Cout)
    wc = jnp.zeros((KDIM, cout_pad), jnp.float32).at[:, :Cout].set(w_flat)
    bc = jnp.zeros((1, cout_pad), jnp.float32).at[0, :Cout].set(b_conv)
    wf = jnp.zeros((cout_pad, ncls_pad), jnp.float32).at[:Cout, :NCLS].set(w_fc)
    bf = jnp.zeros((1, ncls_pad), jnp.float32).at[0, :NCLS].set(b_fc)

    # block-diagonal averaging matrix: row b averages that element's H*W rows
    rows = jnp.arange(bblk, dtype=jnp.int32)[:, None]
    cols = jnp.arange(bblk * H * W, dtype=jnp.int32)[None, :]
    pool_mat = jnp.where(cols // (H * W) == rows, 1.0 / (H * W), 0.0).astype(jnp.float32)

    flops = (2 * b_pad * H * W * KDIM * cout_pad          # conv matmul
             + 2 * b_pad * bblk * H * W * cout_pad        # pooling matmul
             + 2 * b_pad * cout_pad * ncls_pad)           # fc matmul
    transcendentals = b_pad * H * W * cout_pad            # tanh
    bytes_accessed = 4 * (b_pad * H * W * KDIM + KDIM * cout_pad + cout_pad
                          + bblk * bblk * H * W + cout_pad * ncls_pad + ncls_pad
                          + b_pad * ncls_pad)

    out = pl.pallas_call(
        _conv_net_kernel,
        out_shape=jax.ShapeDtypeStruct((n_blocks, bblk, ncls_pad), jnp.float32),
        grid_spec=pltpu.PrefetchScalarGridSpec(
            num_scalar_prefetch=0,
            grid=(n_blocks,),
            in_specs=[
                pl.BlockSpec((bblk * H * W, KDIM), lambda i: (i, 0)),
                pl.BlockSpec((KDIM, cout_pad), lambda i: (0, 0)),
                pl.BlockSpec((1, cout_pad), lambda i: (0, 0)),
                pl.BlockSpec((bblk, bblk * H * W), lambda i: (0, 0)),
                pl.BlockSpec((cout_pad, ncls_pad), lambda i: (0, 0)),
                pl.BlockSpec((1, ncls_pad), lambda i: (0, 0)),
            ],
            out_specs=pl.BlockSpec((1, bblk, ncls_pad), lambda i: (i, 0, 0)),
        ),
        compiler_params=pltpu.CompilerParams(
            dimension_semantics=("parallel",)),
        cost_estimate=pl.CostEstimate(flops=flops,
                                      transcendentals=transcendentals,
                                      bytes_accessed=bytes_accessed),
    )(patches2d, wc, bc, pool_mat, wf, bf)

    return out.reshape(b_pad, ncls_pad)[:B, :NCLS]


def init_params(key, in_channels, hidden_channels, n_classes):
    """Deterministic init mirroring the module: delta-orthogonal conv weight,
    gaussian conv bias, default-Linear-style fc init."""
    k1, k2, k3, k4 = jax.random.split(key, 4)

    # delta-orthogonal: zeros except center tap, which holds an orthogonal map.
    a = jax.random.normal(k1, (hidden_channels, hidden_channels), jnp.float32)
    q, _ = jnp.linalg.qr(a)
    center = q[:, :in_channels]                      # (Cout, Cin), orthonormal columns
    w_conv = jnp.zeros((3, 3, in_channels, hidden_channels), jnp.float32)
    w_conv = w_conv.at[1, 1].set(center.T)           # HWIO, center tap only

    b_conv = 1e-2 * jax.random.normal(k2, (hidden_channels,), jnp.float32)

    bound = 1.0 / jnp.sqrt(float(hidden_channels))
    w_fc = jax.random.uniform(k3, (hidden_channels, n_classes), jnp.float32,
                              minval=-bound, maxval=bound)
    b_fc = jax.random.uniform(k4, (n_classes,), jnp.float32,
                              minval=-bound, maxval=bound)
    return w_conv, b_conv, w_fc, b_fc


def reference_forward(x_nchw, w_conv_hwio, b_conv, w_fc, b_fc):
    """Pure-JAX reference of the same forward pass (for a sanity check)."""
    x_nhwc = jnp.transpose(x_nchw, (0, 2, 3, 1))
    y = jax.lax.conv_general_dilated(
        x_nhwc, w_conv_hwio, window_strides=(1, 1), padding="SAME",
        dimension_numbers=("NHWC", "HWIO", "NHWC"))
    y = jnp.tanh(y + b_conv[None, None, None, :])
    pooled = jnp.mean(y, axis=(1, 2))                # (B, Cout)
    return pooled @ w_fc + b_fc[None, :]


if __name__ == "__main__":
    B, Cin, H, W = 2, 4, 16, 16
    hidden_channels, n_classes = 32, 10

    key = jax.random.PRNGKey(0)
    kx, kp = jax.random.split(key)
    x = jax.random.normal(kx, (B, Cin, H, W), jnp.float32)
    w_conv, b_conv, w_fc, b_fc = init_params(kp, Cin, hidden_channels, n_classes)

    out = conv_net_forward(x, w_conv, b_conv, w_fc, b_fc)
    out = jax.block_until_ready(out)

    ref = reference_forward(x, w_conv, b_conv, w_fc, b_fc)
    assert out.shape == (B, n_classes)
    assert jnp.allclose(out, ref, rtol=1e-4, atol=1e-4), "mismatch vs reference"

    print("KERNEL_OK")
</pallas_src>

<mosaic_0001>
module attributes {stable_mosaic.version = 11 : i64} {
  func.func @_conv_net_kernel(%arg0: i32, %arg1: memref<256x36xf32, #tpu.memory_space<vmem>>, %arg2: memref<36x128xf32, #tpu.memory_space<vmem>>, %arg3: memref<1x128xf32, #tpu.memory_space<vmem>>, %arg4: memref<1x256xf32, #tpu.memory_space<vmem>>, %arg5: memref<128x128xf32, #tpu.memory_space<vmem>>, %arg6: memref<1x128xf32, #tpu.memory_space<vmem>>, %arg7: memref<1x1x128xf32, #tpu.memory_space<vmem>>) attributes {dimension_semantics = [#tpu.dimension_semantics<parallel>], iteration_bounds = array<i64: 2>, scalar_prefetch = 0 : i64, scratch_operands = 0 : i64, tpu.core_type = #tpu.core_type<tc>, window_params = [{transform_indices = @transform_0, window_bounds = array<i64: 256, 36>}, {pipeline_mode = #tpu.pipeline_mode<synchronous>, transform_indices = @transform_1, window_bounds = array<i64: 36, 128>}, {pipeline_mode = #tpu.pipeline_mode<synchronous>, transform_indices = @transform_2, window_bounds = array<i64: 1, 128>}, {pipeline_mode = #tpu.pipeline_mode<synchronous>, transform_indices = @transform_3, window_bounds = array<i64: 1, 256>}, {pipeline_mode = #tpu.pipeline_mode<synchronous>, transform_indices = @transform_4, window_bounds = array<i64: 128, 128>}, {pipeline_mode = #tpu.pipeline_mode<synchronous>, transform_indices = @transform_5, window_bounds = array<i64: 1, 128>}, {transform_indices = @transform_6, window_bounds = array<i64: 1, 1, 128>}]} {
    %c0 = arith.constant 0 : index
    %c0_0 = arith.constant 0 : index
    %0 = vector.load %arg1[%c0, %c0_0] : memref<256x36xf32, #tpu.memory_space<vmem>>, vector<256x36xf32>
    %c0_1 = arith.constant 0 : index
    %c0_2 = arith.constant 0 : index
    %1 = vector.load %arg2[%c0_1, %c0_2] : memref<36x128xf32, #tpu.memory_space<vmem>>, vector<36x128xf32>
    %cst = arith.constant dense<0.000000e+00> : vector<256x128xf32>
    %2 = tpu.matmul %0, %1, %cst {dimension_numbers = #tpu.dot_dimension_numbers<[1], [0], [0], [1], [0, 0, 1, 1], [], []>} : vector<256x36xf32>, vector<36x128xf32>, vector<256x128xf32> -> vector<256x128xf32>
    %c0_3 = arith.constant 0 : index
    %c0_4 = arith.constant 0 : index
    %3 = vector.load %arg3[%c0_3, %c0_4] : memref<1x128xf32, #tpu.memory_space<vmem>>, vector<1x128xf32>
    %4 = vector.broadcast %3 : vector<1x128xf32> to vector<256x128xf32>
    %5 = arith.addf %2, %4 : vector<256x128xf32>
    %6 = math.tanh %5 : vector<256x128xf32>
    %c0_5 = arith.constant 0 : index
    %c0_6 = arith.constant 0 : index
    %7 = vector.load %arg4[%c0_5, %c0_6] : memref<1x256xf32, #tpu.memory_space<vmem>>, vector<1x256xf32>
    %cst_7 = arith.constant dense<0.000000e+00> : vector<1x128xf32>
    %8 = tpu.matmul %7, %6, %cst_7 {dimension_numbers = #tpu.dot_dimension_numbers<[1], [0], [0], [1], [0, 0, 1, 1], [], []>} : vector<1x256xf32>, vector<256x128xf32>, vector<1x128xf32> -> vector<1x128xf32>
    %c0_8 = arith.constant 0 : index
    %c0_9 = arith.constant 0 : index
    %9 = vector.load %arg5[%c0_8, %c0_9] : memref<128x128xf32, #tpu.memory_space<vmem>>, vector<128x128xf32>
    %cst_10 = arith.constant dense<0.000000e+00> : vector<1x128xf32>
    %10 = tpu.matmul %8, %9, %cst_10 {dimension_numbers = #tpu.dot_dimension_numbers<[1], [0], [0], [1], [0, 0, 1, 1], [], []>} : vector<1x128xf32>, vector<128x128xf32>, vector<1x128xf32> -> vector<1x128xf32>
    %c0_11 = arith.constant 0 : index
    %c0_12 = arith.constant 0 : index
    %11 = vector.load %arg6[%c0_11, %c0_12] : memref<1x128xf32, #tpu.memory_space<vmem>>, vector<1x128xf32>
    %12 = arith.addf %10, %11 : vector<1x128xf32>
    %c0_13 = arith.constant 0 : index
    %c0_14 = arith.constant 0 : index
    %c0_15 = arith.constant 0 : index
    %13 = vector.load %arg7[%c0_13, %c0_14, %c0_15] : memref<1x1x128xf32, #tpu.memory_space<vmem>>, vector<1x1x128xf32>
    %14 = vector.shape_cast %13 : vector<1x1x128xf32> to vector<1x128xf32>
    %15 = vector.shape_cast %12 : vector<1x128xf32> to vector<1x1x128xf32>
    tpu.vector_store %arg7[%c0_13, %c0_14, %c0_15], %15 {strides = array<i32>} : memref<1x1x128xf32, #tpu.memory_space<vmem>>, vector<1x1x128xf32>,
    return
  }
  func.func @transform_0(%arg0: i32) -> (i32, i32) {
    %c0_i32 = arith.constant 0 : i32
    %c0_i32_0 = arith.constant 0 : i32
    return %arg0, %c0_i32 : i32, i32
  }
  func.func @transform_1(%arg0: i32) -> (i32, i32) {
    %c0_i32 = arith.constant 0 : i32
    %c0_i32_0 = arith.constant 0 : i32
    %c0_i32_1 = arith.constant 0 : i32
    return %c0_i32, %c0_i32_0 : i32, i32
  }
  func.func @transform_2(%arg0: i32) -> (i32, i32) {
    %c0_i32 = arith.constant 0 : i32
    %c0_i32_0 = arith.constant 0 : i32
    %c0_i32_1 = arith.constant 0 : i32
    return %c0_i32, %c0_i32_0 : i32, i32
  }
  func.func @transform_3(%arg0: i32) -> (i32, i32) {
    %c0_i32 = arith.constant 0 : i32
    %c0_i32_0 = arith.constant 0 : i32
    %c0_i32_1 = arith.constant 0 : i32
    return %c0_i32, %c0_i32_0 : i32, i32
  }
  func.func @transform_4(%arg0: i32) -> (i32, i32) {
    %c0_i32 = arith.constant 0 : i32
    %c0_i32_0 = arith.constant 0 : i32
    %c0_i32_1 = arith.constant 0 : i32
    return %c0_i32, %c0_i32_0 : i32, i32
  }
  func.func @transform_5(%arg0: i32) -> (i32, i32) {
    %c0_i32 = arith.constant 0 : i32
    %c0_i32_0 = arith.constant 0 : i32
    %c0_i32_1 = arith.constant 0 : i32
    return %c0_i32, %c0_i32_0 : i32, i32
  }
  func.func @transform_6(%arg0: i32) -> (i32, i32, i32) {
    %c0_i32 = arith.constant 0 : i32
    %c0_i32_0 = arith.constant 0 : i32
    %c0_i32_1 = arith.constant 0 : i32
    return %arg0, %c0_i32, %c0_i32_0 : i32, i32, i32
  }
}

</mosaic_0001>

<bundles_post_ra>
// kernel: tpu_custom_call.1
= control target key start
LH: loop header
LB: loop body
LE: loop exit
PB: predicated region body
PF: predicated region fallthrough
CT: control target
= control target key end

     0   :  { %11 = vsyncpa [#allocation3], 0  ;;  %s1735_s0 = inlined_call_operand.vmem [shape: f32[512,36], index: 0, kind: input, shape index: {}]   ;;  %s1736_s1 = inlined_call_operand.vmem [shape: f32[36,128], index: 1, kind: input, shape index: {}]   ;;  %s1737_s2 = inlined_call_operand.vmem [shape: f32[1,128], index: 2, kind: input, shape index: {}]   ;;  %s1738_s3 = inlined_call_operand.vmem [shape: f32[1,256], index: 3, kind: input, shape index: {}]   ;;  %s1739_s4 = inlined_call_operand.vmem [shape: f32[128,128], index: 4, kind: input, shape index: {}]   ;;  %s1740_s5 = inlined_call_operand.vmem [shape: f32[1,128], index: 5, kind: input, shape index: {}]   ;;  %s1741_s6 = inlined_call_operand.hbm [shape: f32[2,1,128], index: 6, kind: output, shape index: {}]  }
   0x1   :  { %13 = vsyncpa [#allocation3 + $0x1], 0  ;;  %s1389_s21 = smov 0   ;;  %s1391_s22 = smov 0  }
   0x2   :  { %s1393_s23 = smov 0   ;;  %s1395_s24 = smov 0  }
   0x3 LB: > { %s1410_s25 = sadd.s32 4294967295, %s1348_s24   ;;  %s891_s26 = sadd.s32 4294967294, %s1348_s24   ;;  %s1348_s24 = sphi %s1395_s24, %s1747_s24   ;;  %s1344_s23 = sphi %s1393_s23, %s1746_s23   ;;  %s1340_s22 = sphi %s1391_s22, %s1745_s22   ;;  %s1336_s21 = sphi %s1389_s21, %s1744_s21  }
   0x4   : > { %s1414_s27 = sadd.s32 1, %s1348_s24   ;;  %s157_s28 = sadd.s32 1, %s1344_s23 }
   0x5   : > { %s154_s29 = ssub.s32 %s1348_s24, %s1414_s27  ;;  %p167_p0 = scmp.ne.s32.totalorder %s1344_s23, %s1340_s22 }
   0x6   : > { %p155_p1 = scmp.eq.s32.totalorder %s154_s29, 0  ;;  %p168_p2 = scmp.eq.s32.totalorder %s1410_s25, 1 }
   0x7   : > { %p173_p3 = scmp.ne.s32.totalorder %s1340_s22, %s1336_s21  ;;  %p174_p4 = scmp.eq.s32.totalorder %s891_s26, 1 }
   0x8   : > { %s1425_s30 = scalar_select %p155_p1, %s1344_s23, %s157_s28  }
   0x9   : > { %p1427_p5 = por %p168_p2, %p167_p0  ;;  %p1431_p6 = por %p174_p4, %p173_p3 }
   0xa   : > { %p894_p7 = scmp.ge.s32.totalorder %s1348_s24, 1  ;;  %p216_p8 = scmp.lt.s32.totalorder %s1348_s24, 3 }
   0xc   : > { %p217_p9 = pnand %p894_p7, %p216_p8 }
   0xd   : > { %v283_v0 = vld [vmem:[%s1736_s1] sm:$0xff] (!%p217_p9)  ;;  %v284_v1 = vld [vmem:[%s1736_s1 + $0x8] sm:$0xff] (!%p217_p9)  ;;  %v285_v2 = vld [vmem:[%s1736_s1 + $0x10] sm:$0xff] (!%p217_p9)  ;;  %s895_s15 = sshll.u32 (!%p217_p9), %s1410_s25, 5  ;;  %vm295_vm0 = vcmask (!%p217_p9), 293888   ;;  %vm392_vm1 = vcmask (!%p217_p9), 1043456   ;;  %v655_v39 = vlaneseq (!%p217_p9) }
   0xe   : > { %220 = sbr.rel (%p217_p9) target bundleno = 761 (0x2f9), region = 44  ;;  %v1116_v3 = vpack.c.bf16 (!%p217_p9), %v284_v1, %v283_v0  ;;  %v286_v4 = vld [vmem:[%s1736_s1 + $0x18] sm:$0xff] (!%p217_p9)  ;;  %p246_p10 = scmp.lt.s32.totalorder (!%p217_p9), %s895_s15, 63  ;;  %v287_v6 = vld [vmem:[%s1736_s1 + $0x20] sm:$0xf] (!%p217_p9)  ;;  %vm1351_vm2 = vmmov (!%p217_p9), 0  }
   0xf   : > { %v1120_v5 = vpack.c.bf16 (!%p217_p9), %v286_v4, %v285_v2  ;;  %v656_v40 = vshrl.u32 (!%p217_p9), %v655_v39, 7  ;;  %v653_v42 = vld [vmem:[%s1738_s3] sm:$0x3] (!%p217_p9) }
  0x10   : > { %1117 = vmatprep.subr.bf16.mxu0 (!%p217_p9), %v1116_v3  ;;  %v1530_v46 = vld [vmem:[%s1737_s2] ss:$0 sm:$0xff] (!%p217_p9) }
  0x11   : > { %1119 = vmatpush3.bf16.msra.mxu0 (!%p217_p9), %v1116_v3  ;;  %v661_v41 = vsub.s32 (!%p217_p9), 1, %v656_v40  ;;  %v657_v43 = vsub.s32 (!%p217_p9), 0, %v656_v40 }
  0x12   : > { %1121 = vmatprep.subr.bf16.mxu0 (!%p217_p9), %v1120_v5 }
  0x13   : > { %v662_v44 = vrot.slane (!%p217_p9), %v653_v42, %v661_v41  ;;  %v1525_v45 = vrot.slane (!%p217_p9), %v653_v42, %v657_v43 }
  0x15   : > { %s1749_s15 = smov (!%p246_p10, %s895_s15), 63  ;;  %1123 = vmatpush3.bf16.msra.mxu0 %v1120_v5  ;;  %729 = vmatprep.mubr.f32.mxu1 %v662_v44 }
  0x16   : > { %s896_s18 = sshll.u32 %s1749_s15, 3  ;;  %1031 = vmatprep.subr.msk.mxu0 %vm392_vm1, %v287_v6  ;;  %s243_s15 = sand.u32 1, %s1340_s22  }
  0x17   : > { %s1456_s29 = scalar_lea.vmem %s1735_s0, %s896_s18  ;;  %s931_s18 = sshll.u32 %s1410_s25, 4 }
  0x18   : > { %v251_v7 = vld [vmem:[%s1456_s29] sm:$0xff]  ;;  %v252_v8 = vld [vmem:[%s1456_s29 + $0x8] sm:$0xff]  ;;  %v253_v9 = vld [vmem:[%s1456_s29 + $0x10] sm:$0xff]  ;;  %s244_s19 = scalar_lea.vmem [#allocation2], %s243_s15  ;;  %s824_s9 = scalar_lea.sflag [#allocation3], %s243_s15 }
  0x19   : > { %1033 = vmatprep.mubr.msk.f32.mxu0 %vm295_vm0, %v251_v7  ;;  %1032 = vmatpush3.msk.msra.mxu0 %vm392_vm1, %v287_v6  ;;  %v254_v10 = vld [vmem:[%s1456_s29 + $0x18] sm:$0xff]  ;;  %v255_v11 = vld [vmem:[%s1456_s29 + $0x20] sm:$0xff]  ;;  %v256_v12 = vld [vmem:[%s1456_s29 + $0x28] sm:$0xff]  ;;  %s836_s20 = sshll.u32 %s244_s19, 4  ;;  %s1353_s25 = smov [#allocation2]   ;;  %s1695_s20 = int_to_ptr.vmem [resolvable:$true] %s836_s20 }
  0x1a   : > { %1034 = vmatmul.mubr.msk.f32.vlgmr.msra.gmra.mrb[0].mxu0 %vm295_vm0, %v252_v8  ;;  %v257_v13 = vld [vmem:[%s1456_s29 + $0x30] sm:$0xff]  ;;  %v258_v14 = vld [vmem:[%s1456_s29 + $0x38] sm:$0xff]  ;;  %v259_v15 = vld [vmem:[%s1456_s29 + $0x40] sm:$0xff]  ;;  %s1286_s10 = scalar_lea.vmem %s1695_s20, 16  ;;  %s1290_s11 = sshll.u32 %s1353_s25, 4  ;;  %s1291_s11 = int_to_ptr.vmem [resolvable:$false] %s1290_s11 }
  0x1b   : > { %1036 = vmatprep.mubr.msk.f32.mxu0 %vm295_vm0, %v253_v9  ;;  %v260_v16 = vld [vmem:[%s1456_s29 + $0x48] sm:$0xff]  ;;  %v261_v17 = vld [vmem:[%s1456_s29 + $0x50] sm:$0xff]  ;;  %v262_v18 = vld [vmem:[%s1456_s29 + $0x58] sm:$0xff]  ;;  %p1287_p11 = scmp.ne.s32.totalorder %s1695_s20, %s1286_s10  ;;  %s1292_s12 = scalar_lea.vmem %s1291_s11, 32 }
  0x1c   : > { %v263_v19 = vld [vmem:[%s1456_s29 + $0x60] sm:$0xff]  ;;  %v264_v20 = vld [vmem:[%s1456_s29 + $0x68] sm:$0xff]  ;;  %v265_v21 = vld [vmem:[%s1456_s29 + $0x70] sm:$0xff]  ;;  %p1293_p0 = scmp.lt.s32.totalorder %s1695_s20, %s1291_s11  ;;  %p1294_p1 = scmp.lt.s32.totalorder %s1292_s12, %s1286_s10 }
  0x1d   : > { %v266_v22 = vld [vmem:[%s1456_s29 + $0x78] sm:$0xff]  ;;  %v267_v23 = vld [vmem:[%s1456_s29 + $0x80] sm:$0xff]  ;;  %v268_v24 = vld [vmem:[%s1456_s29 + $0x88] sm:$0xff]  ;;  %p1288_p12 = pnand %p1287_p11, %p1427_p5 }
  0x1e   : > { %1037 = vmatmul.mubr.msk.f32.gmra.mrb[2].mxu0 %vm295_vm0, %v254_v10  ;;  %v269_v25 = vld [vmem:[%s1456_s29 + $0x90] sm:$0xff]  ;;  %v270_v26 = vld [vmem:[%s1456_s29 + $0x98] sm:$0xff]  ;;  %v271_v27 = vld [vmem:[%s1456_s29 + $0xa0] sm:$0xff]  ;;  %p1295_p2 = por %p1294_p1, %p1293_p0 }
  0x1f   : > { %1039 = vmatprep.mubr.msk.f32.mxu0 %vm295_vm0, %v255_v11  ;;  %v272_v28 = vld [vmem:[%s1456_s29 + $0xa8] sm:$0xff]  ;;  %v273_v29 = vld [vmem:[%s1456_s29 + $0xb0] sm:$0xff]  ;;  %v274_v30 = vld [vmem:[%s1456_s29 + $0xb8] sm:$0xff]  ;;  %p1289_p13 = pneg %p1288_p12 }
  0x20   : > { %v275_v31 = vld [vmem:[%s1456_s29 + $0xc0] sm:$0xff]  ;;  %v276_v32 = vld [vmem:[%s1456_s29 + $0xc8] sm:$0xff]  ;;  %v277_v33 = vld [vmem:[%s1456_s29 + $0xd0] sm:$0xff] }
  0x21   : > { %v278_v34 = vld [vmem:[%s1456_s29 + $0xd8] sm:$0xff]  ;;  %v279_v35 = vld [vmem:[%s1456_s29 + $0xe0] sm:$0xff]  ;;  %v280_v36 = vld [vmem:[%s1456_s29 + $0xe8] sm:$0xff]  ;;  %p1296_p3 = pnand %p1295_p2, %p1289_p13 }
  0x22   : > { %1040 = vmatmul.mubr.msk.f32.gmra.mrb[4].mxu0 %vm295_vm0, %v256_v12  ;;  %v281_v37 = vld [vmem:[%s1456_s29 + $0xf0] sm:$0xff]  ;;  %v282_v38 = vld [vmem:[%s1456_s29 + $0xf8] sm:$0xff]  ;;  %s1693_s29 = scalar_lea.hbm %s1741_s6, %s931_s18 }
  0x23   : > { %1042 = vmatprep.mubr.msk.f32.mxu0 %vm295_vm0, %v257_v13 }
  0x26   : > { %1043 = vmatmul.mubr.msk.f32.gmra.mrb[6].mxu0 %vm295_vm0, %v258_v14 }
  0x27   : > { %1045 = vmatprep.mubr.msk.f32.mxu0 %vm295_vm0, %v259_v15 }
  0x2a   : > { %1046 = vmatmul.mubr.msk.f32.gmra.mrb[8].mxu0 %vm295_vm0, %v260_v16 }
  0x2b   : > { %1048 = vmatprep.mubr.msk.f32.mxu0 %vm295_vm0, %v261_v17 }
  0x2e   : > { %1049 = vmatmul.mubr.msk.f32.gmra.mrb[10].mxu0 %vm295_vm0, %v262_v18 }
  0x2f   : > { %1051 = vmatprep.mubr.msk.f32.mxu0 %vm295_vm0, %v263_v19 }
  0x32   : > { %1052 = vmatmul.mubr.msk.f32.gmra.mrb[12].mxu0 %vm295_vm0, %v264_v20 }
  0x33   : > { %1054 = vmatprep.mubr.msk.f32.mxu0 %vm295_vm0, %v265_v21 }
  0x36   : > { %1055 = vmatmul.mubr.msk.f32.gmra.mrb[14].mxu0 %vm295_vm0, %v266_v22 }
  0x37   : > { %1057 = vmatprep.mubr.msk.f32.mxu0 %vm295_vm0, %v267_v23 }
  0x3a   : > { %1058 = vmatmul.mubr.msk.f32.gmra.mrb[16].mxu0 %vm295_vm0, %v268_v24 }
  0x3b   : > { %1060 = vmatprep.mubr.msk.f32.mxu0 %vm295_vm0, %v269_v25 }
  0x3e   : > { %1061 = vmatmul.mubr.msk.f32.gmra.mrb[18].mxu0 %vm295_vm0, %v270_v26 }
  0x3f   : > { %1063 = vmatprep.mubr.msk.f32.mxu0 %vm295_vm0, %v271_v27 }
  0x42   : > { %1064 = vmatmul.mubr.msk.f32.gmra.mrb[20].mxu0 %vm295_vm0, %v272_v28 }
  0x43   : > { %1066 = vmatprep.mubr.msk.f32.mxu0 %vm295_vm0, %v273_v29 }
  0x46   : > { %1067 = vmatmul.mubr.msk.f32.gmra.mrb[22].mxu0 %vm295_vm0, %v274_v30 }
  0x47   : > { %1069 = vmatprep.mubr.msk.f32.mxu0 %vm295_vm0, %v275_v31 }
  0x4a   : > { %1070 = vmatmul.mubr.msk.f32.gmra.mrb[24].mxu0 %vm295_vm0, %v276_v32 }
  0x4b   : > { %1072 = vmatprep.mubr.msk.f32.mxu0 %vm295_vm0, %v277_v33 }
  0x4e   : > { %1073 = vmatmul.mubr.msk.f32.gmra.mrb[26].mxu0 %vm295_vm0, %v278_v34 }
  0x4f   : > { %1075 = vmatprep.mubr.msk.f32.mxu0 %vm295_vm0, %v279_v35 }
  0x52   : > { %1076 = vmatmul.mubr.msk.f32.gmra.mrb[28].mxu0 %vm295_vm0, %v280_v36 }
  0x53   : > { %1078 = vmatprep.mubr.msk.f32.mxu0 %vm295_vm0, %v281_v37 }
  0x56   : > { %1079 = vmatmul.mubr.msk.f32.gmra.mrb[30].mxu0 %vm295_vm0, %v282_v38 }
  0xed   : > { %v1035_v47 = vpop.f32.mrb[0].mxu0 }
  0xee   : > { %v468_v48 = vadd.f32 %v1035_v47, %v1530_v46  ;;  %v462_v49 = vpop.f32.mrb[1].mxu0 }
  0xef   : > { %v463_v50 = vadd.f32 %v1530_v46, %v462_v49 }
  0xf0   : > { %1222 = vtanh.f32 %v468_v48 }
  0xf1   : > { %1224 = vtanh.f32 %v463_v50  ;;  %v1038_v51 = vpop.f32.mrb[2].mxu0 }
  0xf2   : > { %v478_v52 = vadd.f32 %v1038_v51, %v1530_v46  ;;  %v472_v53 = vpop.f32.mrb[3].mxu0 }
  0xf3   : > { %v473_v54 = vadd.f32 %v1530_v46, %v472_v53 }
  0xf4   : > { %1226 = vtanh.f32 %v478_v52 }
  0xf5   : > { %1228 = vtanh.f32 %v473_v54  ;;  %v1041_v55 = vpop.f32.mrb[4].mxu0 }
  0xf6   : > { %v488_v56 = vadd.f32 %v1041_v55, %v1530_v46  ;;  %v482_v57 = vpop.f32.mrb[5].mxu0 }
  0xf7   : > { %v483_v58 = vadd.f32 %v1530_v46, %v482_v57 }
  0xf8   : > { %1230 = vtanh.f32 %v488_v56 }
  0xf9   : > { %1232 = vtanh.f32 %v483_v58  ;;  %v1044_v59 = vpop.f32.mrb[6].mxu0 }
  0xfa   : > { %v1538_v60 = vpop.eup %1222  ;;  %v498_v61 = vadd.f32 %v1044_v59, %v1530_v46  ;;  %v492_v62 = vpop.f32.mrb[7].mxu0 }
  0xfb   : > { %v1541_v63 = vpop.eup %1224  ;;  %v493_v0 = vadd.f32 %v1530_v46, %v492_v62 }
  0xfc   : > { %1234 = vtanh.f32 %v498_v61  ;;  %v1126_v1 = vpack.c.bf16 %v1538_v60, %v1541_v63 }
  0xfd   : > { %1236 = vtanh.f32 %v493_v0  ;;  %v1047_v2 = vpop.f32.mrb[8].mxu0 }
  0xfe   : > { %v1546_v3 = vpop.eup %1226  ;;  %v508_v4 = vadd.f32 %v1047_v2, %v1530_v46  ;;  %v502_v5 = vpop.f32.mrb[9].mxu0 }
  0xff   : > { %v1549_v6 = vpop.eup %1228  ;;  %v503_v7 = vadd.f32 %v1530_v46, %v502_v5 }
 0x100   : > { %1238 = vtanh.f32 %v508_v4  ;;  %v1130_v8 = vpack.c.bf16 %v1546_v3, %v1549_v6 }
 0x101   : > { %1240 = vtanh.f32 %v503_v7  ;;  %v1050_v9 = vpop.f32.mrb[10].mxu0 }
 0x102   : > { %v1554_v10 = vpop.eup %1230  ;;  %v518_v11 = vadd.f32 %v1050_v9, %v1530_v46  ;;  %v512_v12 = vpop.f32.mrb[11].mxu0 }
 0x103   : > { %v1557_v13 = vpop.eup %1232  ;;  %v513_v14 = vadd.f32 %v1530_v46, %v512_v12 }
 0x104   : > { %1242 = vtanh.f32 %v518_v11  ;;  %v1134_v15 = vpack.c.bf16 %v1554_v10, %v1557_v13 }
 0x105   : > { %1244 = vtanh.f32 %v513_v14  ;;  %v1053_v16 = vpop.f32.mrb[12].mxu0 }
 0x106   : > { %v1562_v17 = vpop.eup %1234  ;;  %v528_v18 = vadd.f32 %v1053_v16, %v1530_v46  ;;  %v522_v19 = vpop.f32.mrb[13].mxu0 }
 0x107   : > { %v1565_v20 = vpop.eup %1236  ;;  %v523_v21 = vadd.f32 %v1530_v46, %v522_v19 }
 0x108   : > { %1246 = vtanh.f32 %v528_v18  ;;  %v1138_v22 = vpack.c.bf16 %v1562_v17, %v1565_v20 }
 0x109   : > { %1248 = vtanh.f32 %v523_v21  ;;  %v1056_v23 = vpop.f32.mrb[14].mxu0 }
 0x10a   : > { %v1570_v24 = vpop.eup %1238  ;;  %v538_v25 = vadd.f32 %v1056_v23, %v1530_v46  ;;  %v532_v26 = vpop.f32.mrb[15].mxu0 }
 0x10b   : > { %v1573_v27 = vpop.eup %1240  ;;  %v533_v28 = vadd.f32 %v1530_v46, %v532_v26 }
 0x10c   : > { %1250 = vtanh.f32 %v538_v25  ;;  %v1142_v29 = vpack.c.bf16 %v1570_v24, %v1573_v27  ;;  %v735_v24 = vld [vmem:[%s1739_s4] sm:$0xff]  ;;  %v736_v27 = vld [vmem:[%s1739_s4 + $0x8] sm:$0xff] }
 0x10d   : > { %1252 = vtanh.f32 %v533_v28  ;;  %v1059_v30 = vpop.f32.mrb[16].mxu0 }
 0x10e   : > { %v1578_v31 = vpop.eup %1242  ;;  %v548_v32 = vadd.f32 %v1059_v30, %v1530_v46  ;;  %v542_v33 = vpop.f32.mrb[17].mxu0 }
 0x10f   : > { %v1581_v34 = vpop.eup %1244  ;;  %v543_v35 = vadd.f32 %v1530_v46, %v542_v33 }
 0x110   : > { %1254 = vtanh.f32 %v548_v32  ;;  %v1146_v36 = vpack.c.bf16 %v1578_v31, %v1581_v34  ;;  %v1350_v31 = vmov 0.0|0.0   ;;  %v737_v34 = vld [vmem:[%s1739_s4 + $0x10] sm:$0xff] }
 0x111   : > { %1256 = vtanh.f32 %v543_v35  ;;  %v1062_v37 = vpop.f32.mrb[18].mxu0 }
 0x112   : > { %v1586_v38 = vpop.eup %1246  ;;  %v558_v39 = vadd.f32 %v1062_v37, %v1530_v46  ;;  %v552_v40 = vpop.f32.mrb[19].mxu0 }
 0x113   : > { %v1589_v41 = vpop.eup %1248  ;;  %v553_v42 = vadd.f32 %v1530_v46, %v552_v40  ;;  %v740_v40 = vld [vmem:[%s1739_s4 + $0x28] sm:$0xff] }
 0x114   : > { %1258 = vtanh.f32 %v558_v39  ;;  %v1150_v43 = vpack.c.bf16 %v1586_v38, %v1589_v41  ;;  %v739_v39 = vld [vmem:[%s1739_s4 + $0x20] sm:$0xff] }
 0x115   : > { %1260 = vtanh.f32 %v553_v42  ;;  %v1065_v44 = vpop.f32.mrb[20].mxu0  ;;  %v1163_v41 = vpack.c.bf16 %v740_v40, %v739_v39  ;;  %v741_v42 = vld [vmem:[%s1739_s4 + $0x30] sm:$0xff] }
 0x116   : > { %v1594_v47 = vpop.eup %1250  ;;  %v568_v48 = vadd.f32 %v1065_v44, %v1530_v46  ;;  %v562_v49 = vpop.f32.mrb[21].mxu0  ;;  %v743_v44 = vld [vmem:[%s1739_s4 + $0x40] sm:$0xff] }
 0x117   : > { %v1597_v50 = vpop.eup %1252  ;;  %v563_v51 = vadd.f32 %v1530_v46, %v562_v49  ;;  %v745_v49 = vld [vmem:[%s1739_s4 + $0x50] sm:$0xff] }
 0x118   : > { %1262 = vtanh.f32 %v568_v48  ;;  %v1154_v52 = vpack.c.bf16 %v1594_v47, %v1597_v50  ;;  %v744_v47 = vld [vmem:[%s1739_s4 + $0x48] sm:$0xff]  ;;  %v746_v50 = vld [vmem:[%s1739_s4 + $0x58] sm:$0xff] }
 0x119   : > { %1264 = vtanh.f32 %v563_v51  ;;  %v1068_v53 = vpop.f32.mrb[22].mxu0  ;;  %v1169_v48 = vpack.c.bf16 %v744_v47, %v743_v44  ;;  %v1172_v51 = vpack.c.bf16 %v746_v50, %v745_v49 }
 0x11a   : > { %v1255_v54 = vpop.eup %1254  ;;  %v578_v55 = vadd.f32 %v1068_v53, %v1530_v46  ;;  %v572_v56 = vpop.f32.mrb[23].mxu0  ;;  %v748_v53 = vld [vmem:[%s1739_s4 + $0x68] sm:$0xff] }
 0x11b   : > { %v1257_v57 = vpop.eup %1256  ;;  %v573_v58 = vadd.f32 %v1530_v46, %v572_v56  ;;  %v750_v56 = vld [vmem:[%s1739_s4 + $0x78] sm:$0xff] }
 0x11c   : > { %1266 = vtanh.f32 %v578_v55  ;;  %v1124_v59 = vpack.c.bf16 %v1255_v54, %v1257_v57  ;;  %v749_v55 = vld [vmem:[%s1739_s4 + $0x70] sm:$0xff] }
 0x11d   : > { %1268 = vtanh.f32 %v573_v58  ;;  %v1071_v61 = vpop.f32.mrb[24].mxu0  ;;  %v1178_v57 = vpack.c.bf16 %v750_v56, %v749_v55  ;;  %v1352_v58 = vmov 0.0  }
 0x11e   : > { %v1259_v62 = vpop.eup %1258  ;;  %v588_v0 = vadd.f32 %v1071_v61, %v1530_v46  ;;  %v582_v2 = vpop.f32.mrb[25].mxu0  ;;  %1125 = vmatprep.subr.bf16.mxu1 %v1124_v59 }
 0x11f   : > { %v1261_v4 = vpop.eup %1260  ;;  %v583_v5 = vadd.f32 %v1530_v46, %v582_v2  ;;  %1127 = vmatpush3.bf16.msra.mxu1 %v1126_v1 }
 0x120   : > { %1270 = vtanh.f32 %v588_v0  ;;  %v1128_v7 = vpack.c.bf16 %v1259_v62, %v1261_v4  ;;  %v751_v0 = vld [vmem:[%s1740_s5] sm:$0x1] }
 0x121   : > { %1272 = vtanh.f32 %v583_v5  ;;  %v1074_v9 = vpop.f32.mrb[26].mxu0 }
 0x122   : > { %v1263_v11 = vpop.eup %1262  ;;  %v598_v12 = vadd.f32 %v1074_v9, %v1530_v46  ;;  %v592_v14 = vpop.f32.mrb[27].mxu0  ;;  %1129 = vmatprep.subr.bf16.mxu1 %v1128_v7 }
 0x123   : > { %v1265_v16 = vpop.eup %1264  ;;  %v593_v18 = vadd.f32 %v1530_v46, %v592_v14  ;;  %1131 = vmatpush3.bf16.msra.mxu1 %v1130_v8 }
 0x124   : > { %1274 = vtanh.f32 %v598_v12  ;;  %v1132_v19 = vpack.c.bf16 %v1263_v11, %v1265_v16 }
 0x125   : > { %1276 = vtanh.f32 %v593_v18  ;;  %v1077_v60 = vpop.f32.mrb[28].mxu0 }
 0x126   : > { %v1267_v63 = vpop.eup %1266  ;;  %v608_v1 = vadd.f32 %v1077_v60, %v1530_v46  ;;  %v602_v21 = vpop.f32.mrb[29].mxu0  ;;  %1133 = vmatprep.subr.bf16.mxu1 %v1132_v19 }
 0x127   : > { %v1269_v23 = vpop.eup %1268  ;;  %v603_v25 = vadd.f32 %v1530_v46, %v602_v21  ;;  %1135 = vmatpush3.bf16.msra.mxu1 %v1134_v15 }
 0x128   : > { %1278 = vtanh.f32 %v608_v1  ;;  %v1136_v26 = vpack.c.bf16 %v1267_v63, %v1269_v23 }
 0x129   : > { %1280 = vtanh.f32 %v603_v25  ;;  %v1080_v3 = vpop.f32.mrb[30].mxu0 }
 0x12a   : > { %v1271_v6 = vpop.eup %1270  ;;  %v618_v8 = vadd.f32 %v1080_v3, %v1530_v46  ;;  %v612_v28 = vpop.f32.mrb[31].mxu0  ;;  %1137 = vmatprep.subr.bf16.mxu1 %v1136_v26 }
 0x12b   : > { %v1273_v30 = vpop.eup %1272  ;;  %v613_v32 = vadd.f32 %v1530_v46, %v612_v28  ;;  %1139 = vmatpush3.bf16.msra.mxu1 %v1138_v22 }
 0x12c   : > { %1282 = vtanh.f32 %v618_v8  ;;  %v1140_v33 = vpack.c.bf16 %v1271_v6, %v1273_v30 }
 0x12d   : > { %1284 = vtanh.f32 %v613_v32 }
 0x12e   : > { %v1275_v10 = vpop.eup %1274  ;;  %1141 = vmatprep.subr.bf16.mxu1 %v1140_v33 }
 0x12f   : > { %v1277_v13 = vpop.eup %1276  ;;  %1143 = vmatpush3.bf16.msra.mxu1 %v1142_v29  ;;  %v1157_v29 = vpack.c.bf16 %v736_v27, %v735_v24 }
 0x130   : > { %v1144_v15 = vpack.c.bf16 %v1275_v10, %v1277_v13 }
 0x132   : > { %v1279_v35 = vpop.eup %1278  ;;  %1145 = vmatprep.subr.bf16.mxu1 %v1144_v15 }
 0x133   : > { %v1281_v37 = vpop.eup %1280  ;;  %1147 = vmatpush3.bf16.msra.mxu1 %v1146_v36  ;;  %v738_v36 = vld [vmem:[%s1739_s4 + $0x18] sm:$0xff] }
 0x134   : > { %v1148_v46 = vpack.c.bf16 %v1279_v35, %v1281_v37  ;;  %v1160_v38 = vpack.c.bf16 %v738_v36, %v737_v34 }
 0x136   : > { %v1283_v17 = vpop.eup %1282  ;;  %1149 = vmatprep.subr.bf16.mxu1 %v1148_v46 }
 0x137   : > { %v1285_v20 = vpop.eup %1284  ;;  %1151 = vmatpush3.bf16.msra.mxu1 %v1150_v43 }
 0x138   : > { %v1152_v22 = vpack.c.bf16 %v1283_v17, %v1285_v20 }
 0x13a   : > { %1153 = vmatprep.subr.bf16.mxu1 %v1152_v22 }
 0x13b   : > { %1155 = vmatpush3.bf16.msra.mxu1 %v1154_v52  ;;  %v747_v52 = vld [vmem:[%s1739_s4 + $0x60] sm:$0xff] }
 0x13c   : > { %1156 = vmatprep.subr.bf16.mxu1 %v1350_v31  ;;  %v1175_v54 = vpack.c.bf16 %v748_v53, %v747_v52 }
 0x13e   : > { %730 = vmatmul.mubr.f32.vlgmr.msra.gmra.mrb[0].mxu1 %v1525_v45  ;;  %v742_v45 = vld [vmem:[%s1739_s4 + $0x38] sm:$0xff] }
 0x13f   : > { %1158 = vmatpush3.bf16.msra.mxu1 %v1157_v29  ;;  %v1166_v43 = vpack.c.bf16 %v742_v45, %v741_v42  ;;  %1113 = vmatprep.mubr.msk.f32.mxu1 %vm1351_vm2, %v1352_v58 }
 0x140   : > { %1159 = vmatprep.subr.bf16.mxu1 %v1350_v31 }
 0x143   : > { %1161 = vmatpush3.bf16.msra.mxu1 %v1160_v38 }
 0x144   : > { %1162 = vmatprep.subr.bf16.mxu1 %v1350_v31 }
 0x147   : > { %1164 = vmatpush3.bf16.msra.mxu1 %v1163_v41 }
 0x148   : > { %1165 = vmatprep.subr.bf16.mxu1 %v1350_v31 }
 0x14b   : > { %1167 = vmatpush3.bf16.msra.mxu1 %v1166_v43 }
 0x14c   : > { %1168 = vmatprep.subr.bf16.mxu1 %v1350_v31 }
 0x14f   : > { %1170 = vmatpush3.bf16.msra.mxu1 %v1169_v48 }
 0x150   : > { %1171 = vmatprep.subr.bf16.mxu1 %v1350_v31 }
 0x153   : > { %1173 = vmatpush3.bf16.msra.mxu1 %v1172_v51 }
 0x154   : > { %1174 = vmatprep.subr.bf16.mxu1 %v1350_v31 }
 0x157   : > { %1176 = vmatpush3.bf16.msra.mxu1 %v1175_v54 }
 0x158   : > { %1177 = vmatprep.subr.bf16.mxu1 %v1350_v31 }
 0x15b   : > { %1179 = vmatpush3.bf16.msra.mxu1 %v1178_v57 }
 0x211   : > { %v1003_v59 = vpop.f32.mrb[0].mxu1 }
 0x212   : > { %v1004_v61 = vpop.f32.mrb[1].mxu1 }
 0x213   : > { %v1005_v62 = vadd.f32 %v1004_v61, %v1003_v59 }
 0x215   : > { %1114 = vmatmul.mubr.f32.vlgmr.msra.gmra.mrb[2].mxu1 %v1005_v62 }
 0x2e8   : > { %v818_v2 = vpop.f32.mrb[2].mxu1 }
 0x2e9   : > { %v819_v4 = vadd.f32 %v818_v2, %v751_v0  ;;  %v1115_v5 = vpop.f32.mrb[3].mxu1 }
 0x2eb   : > { %822 = vst [vmem:[%s244_s19] sm:$0x1] %v819_v4 }
 0x2ec   : > { %1299 = shalt.err (!%p1296_p3)
}
 0x2ed   : > { %s1300_s13 = scalar_lea.hbm %s1693_s29, 16  ;;  %s1304_s16 = scalar_lea.hbm %s1741_s6, 32 }
 0x2ee   : > { %p1301_p4 = scmp.ne.s32.totalorder %s1693_s29, %s1300_s13  ;;  %p1305_p9 = scmp.lt.u32.totalorder %s1693_s29, %s1741_s6 }
 0x2ef   : > { %p1306_p10 = scmp.lt.u32.totalorder %s1304_s16, %s1300_s13  ;;  %p1308_p12 = scmp.lt.u32.totalorder %s1300_s13, %s1693_s29 }
 0x2f0   : > { %p1302_p7 = pnand %p1301_p4, %p1427_p5 }
 0x2f1   : > { %p1307_p11 = por %p1306_p10, %p1305_p9 }
 0x2f2   : > { %p1303_p8 = pneg %p1302_p7 }
 0x2f3   : > { %p1309_p13 = por %p1308_p12, %p1307_p11 }
 0x2f5   : > { %p1310_p0 = pnand %p1309_p13, %p1303_p8 }
 0x2f7   : > { %1313 = shalt.err (!%p1310_p0)
}
 0x2f8   : > { %1180 = dma.vmem_to_hbm [thread:$0]  (%p1427_p5), %s1695_s20, 16, %s1693_s29, %s824_s9  }
 0x2f9 PF: > { %p1186_p1 = scmp.ge.s32.totalorder %s1348_s24, 2  ;;  %s848_s19 = sand.u32 1, %s1336_s21  }
 0x2fa   : > { %s849_s26 = scalar_lea.sflag [#allocation3], %s848_s19 }
 0x2fb   : > { %p1183_p2 = pnand %p1186_p1, %p1431_p6 }
 0x2fd   : > { %1331 = dma.done.wait (!%p1183_p2), %s849_s26, 16  }
 0x2fe   : > { %1333 = vsyncadd (!%p1183_p2), %s849_s26, 4294967280  ;;  %p16_p3 = scmp.ge.s32.totalorder %s1414_s27, 4   ;;  %s1744_s21 = smov %s1340_s22 }
 0x2ff   : > { %s1745_s22 = smov %s1344_s23  ;;  %s1746_s23 = smov %s1425_s30 }
 0x300   : > { %s1747_s24 = smov %s1414_s27  ;;  %18 = sbr.rel (!%p16_p3) target bundleno = 3 (0x3), region = 79 }
 0x307   :  { %853 = vsyncpa [#allocation3], 1 }
 0x308   :  { %855 = vsyncpa [#allocation3 + $0x1], 1 }

</bundles_post_ra>
